<compile_context>
chip_gen: v5e
topology: v5e:2x2
jax: 0.10.0
libtpu: 0.0.40
codegen_flags: <defaults>
</compile_context>

<pallas_src>
import jax
import jax.numpy as jnp
import numpy as np
from jax.experimental import pallas as pl
from jax.experimental.pallas import tpu as pltpu


def _round_up(x, m):
    return ((x + m - 1) // m) * m


def _vmem_limit_bytes():
    """Generation-aware VMEM limit: ~48 MiB on 64-MiB parts (v7x), ~100 MiB on
    128-MiB parts (v5e/v6e).  Conservative fallback if the query fails."""
    cap = None
    try:
        info = pltpu.get_tpu_info()
        cap = getattr(info, "vmem_capacity_bytes", None)
    except Exception:
        cap = None
    if cap is None or cap <= 64 * 1024 * 1024:
        return 48 * 1024 * 1024
    return 100 * 1024 * 1024


def _vmem_bytes_estimate(tb, te, S, new_len, x_itemsize, out_itemsize, need_inv):
    """Rough per-core VMEM footprint for a (tb, te) tiling (double-buffered
    pipelined blocks + persistent scratch), with (8,128) padding."""
    x_blk = 2 * tb * _round_up(S, 8) * _round_up(te, 128) * x_itemsize
    o_blk = 2 * tb * _round_up(new_len, 8) * _round_up(te, 128) * out_itemsize
    t2w_blk = 2 * tb * 8 * _round_up(S, 128) * 4
    m_scr = tb * _round_up(new_len, 8) * _round_up(S, 128) * x_itemsize
    inv_scr = tb * _round_up(new_len, 8) * 128 * 4 if need_inv else 0
    return x_blk + o_blk + t2w_blk + m_scr + inv_scr


def _make_kernel(pooling, new_len, tb, seq_len, n_e_tiles, use_boundary,
                 fold_inv, store_inv):
    S = seq_len
    post_scale = (pooling == "mean") and not fold_inv

    def build_and_matmul(t2w_ref, x_ref, o_ref, m_ref, inv_ref):
        w_ids = jax.lax.broadcasted_iota(jnp.int32, (new_len, S), 0)
        t_pos = jax.lax.broadcasted_iota(jnp.int32, (1, S), 1)
        t_ids = None
        if pooling in ("first", "last") and not use_boundary:
            t_ids = jax.lax.broadcasted_iota(jnp.int32, (new_len, S), 1)

        for b in range(tb):                      # tb small -> unrolled at trace time
            t2w_row = t2w_ref[b]                 # (1, S) int32
            mask = w_ids == t2w_row              # (new_len, S) bool
            inv = None
            if pooling == "mean":
                counts = jnp.sum(mask.astype(jnp.float32), axis=1, keepdims=True)
                inv = 1.0 / jnp.maximum(counts, 1.0)          # (new_len, 1) f32
                if fold_inv:
                    # f32 inputs: fold scale into m (entries are 0 or 1/c,
                    # bitwise identical to mask/c) -> no inv scratch, no
                    # per-E-tile VALU multiply.
                    m_b = mask.astype(jnp.float32) * inv
                else:
                    # Keep an exact 0/1 mask in the input dtype (native bf16
                    # MXU path, f32 accumulation); scale after the dot in f32.
                    m_b = mask
                    if store_inv:
                        inv_ref[b] = inv
            elif use_boundary:
                # token_to_words is non-decreasing per row (standard subword
                # tokenizer output, caller-guaranteed via assume_sorted), so
                # the first/last subword of a word is a run boundary: one
                # cheap lane roll instead of a lane-axis min/max reduce.
                if pooling == "first":
                    prev = pltpu.roll(t2w_row, shift=1, axis=1)       # t2w[t-1]
                    bound = jnp.logical_or(t_pos == 0, t2w_row != prev)
                else:  # "last"
                    nxt = pltpu.roll(t2w_row, shift=S - 1, axis=1)    # t2w[t+1]
                    bound = jnp.logical_or(t_pos == S - 1, t2w_row != nxt)
                m_b = jnp.logical_and(mask, bound)
            else:
                # Fallback (unaligned S or unsorted token_to_words).
                if pooling == "first":
                    sel = jnp.min(jnp.where(mask, t_ids, S), axis=1, keepdims=True)
                else:
                    sel = jnp.max(jnp.where(mask, t_ids, -1), axis=1, keepdims=True)
                m_b = jnp.logical_and(mask, t_ids == sel)

            m_b = m_b.astype(m_ref.dtype)
            if n_e_tiles > 1:
                m_ref[b] = m_b               # reuse for the remaining E tiles
            # Interleaved build/matmul: row b's dot issues right after its
            # build, so the VPU mask work for row b+1 hides under the MXU.
            acc = jnp.dot(m_b, x_ref[b], preferred_element_type=jnp.float32)
            if post_scale:
                acc = acc * inv              # (new_len, 1) f32 broadcast
            o_ref[b] = acc.astype(o_ref.dtype)

    def matmul_only(x_ref, o_ref, m_ref, inv_ref):
        # Single batched dot over all tb rows (MXU pushes/pops pipeline across b).
        acc = jnp.einsum("bws,bse->bwe", m_ref[...], x_ref[...],
                         preferred_element_type=jnp.float32)
        if post_scale:
            acc = acc * inv_ref[...]
        o_ref[...] = acc.astype(o_ref.dtype)

    def kernel(t2w_ref, x_ref, o_ref, m_ref, *scratch):
        inv_ref = scratch[0] if store_inv else None
        if n_e_tiles == 1:
            build_and_matmul(t2w_ref, x_ref, o_ref, m_ref, inv_ref)
        else:
            e_idx = pl.program_id(1)

            @pl.when(e_idx == 0)
            def _():
                build_and_matmul(t2w_ref, x_ref, o_ref, m_ref, inv_ref)

            @pl.when(e_idx > 0)
            def _():
                matmul_only(x_ref, o_ref, m_ref, inv_ref)

    return kernel


def subword_pooling(token_embeds, token_to_words, pooling: str,
                    new_len=None, *, assume_sorted: bool = True,
                    max_b_tile: int = 8, max_e_tile=None):
    """token_embeds: (B, S, E); token_to_words: (B, S) int.

    new_len is static (default S, a safe upper bound — every word has at least
    one subword); pass max(token_to_words)+1 if known to avoid padded rows.
    assume_sorted=True requires token_to_words to be non-decreasing per row.
    """
    if pooling not in ("first", "last", "mean"):
        raise ValueError(f"unknown pooling {pooling!r}")
    B, S, E = token_embeds.shape
    if new_len is None:
        new_len = S              # static upper bound; extra rows come out as zeros
    new_len = int(new_len)

    x_dt = jnp.dtype(token_embeds.dtype)
    fold_inv = (pooling == "mean") and (x_dt == jnp.dtype(jnp.float32))
    need_inv_est = (pooling == "mean") and not fold_inv

    vmem_limit = _vmem_limit_bytes()
    budget = int(vmem_limit * 0.85)      # headroom for compiler-internal scratch

    # Embedding-tile candidates: lane-dense (multiple of 128) divisors of E,
    # largest first (full E if the budget allows); unaligned E -> single tile.
    if E % 128 == 0:
        te_cands = sorted({t for t in range(128, E + 1, 128) if E % t == 0},
                          reverse=True)
    else:
        te_cands = [E]
    if max_e_tile is not None:
        te_cands = [t for t in te_cands if t <= max_e_tile] or [te_cands[-1]]

    # Batch-tile candidates: divisors of B, capped so B//tb >= 2 whenever
    # B >= 2 (keeps >= 2 'parallel' steps for megacore sharding).
    tb_max = min(max_b_tile, B)
    if B >= 2:
        tb_max = min(tb_max, max(1, B // 2))
    tb_cands = [d for d in range(tb_max, 0, -1) if B % d == 0]

    # Budget-driven selection: keep te (lane width / DMA row length) as large
    # as possible; shrink tb first when over budget, then te.
    tb, te = tb_cands[-1], te_cands[-1]          # smallest config as last resort
    done = False
    for cand_te in te_cands:
        for cand_tb in tb_cands:
            if _vmem_bytes_estimate(cand_tb, cand_te, S, new_len,
                                    x_dt.itemsize, x_dt.itemsize,
                                    need_inv_est) <= budget:
                tb, te = cand_tb, cand_te
                done = True
                break
        if done:
            break

    n_e = E // te
    store_inv = need_inv_est and n_e > 1
    grid = (B // tb, n_e)        # E innermost: pooling matrix reused across E tiles

    use_boundary = assume_sorted and (S % 128 == 0)
    kernel = _make_kernel(pooling, new_len, tb, S, n_e, use_boundary,
                          fold_inv, store_inv)

    scratch = [pltpu.VMEM((tb, new_len, S), token_embeds.dtype)]   # pooling matrix
    if store_inv:
        scratch.append(pltpu.VMEM((tb, new_len, 1), jnp.float32))  # 1/count (non-f32 mean)

    # (B, 1, S) so the t2w block's last two dims are always full -> no (8,128)
    # alignment hazard when tb < 8.
    t2w = token_to_words.astype(jnp.int32).reshape(B, 1, S)

    return pl.pallas_call(
        kernel,
        out_shape=jax.ShapeDtypeStruct((B, new_len, E), token_embeds.dtype),
        grid_spec=pltpu.PrefetchScalarGridSpec(
            num_scalar_prefetch=0,
            grid=grid,
            in_specs=[
                pl.BlockSpec((tb, 1, S), lambda b, e: (b, 0, 0)),
                pl.BlockSpec((tb, S, te), lambda b, e: (b, 0, e)),
            ],
            out_specs=pl.BlockSpec((tb, new_len, te), lambda b, e: (b, 0, e)),
            scratch_shapes=scratch,
        ),
        compiler_params=pltpu.CompilerParams(
            dimension_semantics=("parallel", "arbitrary"),
            vmem_limit_bytes=vmem_limit,
        ),
    )(t2w, token_embeds)


def _reference(token_embeds, token_to_words, pooling, new_len):
    B, S, E = token_embeds.shape
    t2w = token_to_words[:, None, :].astype(jnp.int32)            # (B, 1, S)
    w_ids = jnp.arange(new_len, dtype=jnp.int32)[None, :, None]   # (1, new_len, 1)
    t_ids = jnp.arange(S, dtype=jnp.int32)[None, None, :]         # (1, 1, S)
    mask = (t2w == w_ids).astype(jnp.float32)                     # (B, new_len, S)
    if pooling == "first":
        sel = jnp.min(jnp.where(mask > 0, t_ids, S), axis=-1, keepdims=True)
        m = mask * (t_ids == sel)
    elif pooling == "last":
        sel = jnp.max(jnp.where(mask > 0, t_ids, -1), axis=-1, keepdims=True)
        m = mask * (t_ids == sel)
    else:
        m = mask / jnp.maximum(jnp.sum(mask, -1, keepdims=True), 1.0)
    return jnp.einsum("bws,bse->bwe", m, token_embeds.astype(jnp.float32))


if __name__ == "__main__":
    key = jax.random.PRNGKey(0)

    # --- Config 1: lane-aligned f32, roll-boundary path, single E tile -------
    B, S, E = 2, 128, 1024
    token_embeds = jax.random.normal(key, (B, S, E), dtype=jnp.float32)
    # Deterministic, non-decreasing subword->word mapping (like a tokenizer).
    t2w_np = np.stack([np.arange(S) // 2, np.arange(S) // 4]).astype(np.int32)
    new_len = int(t2w_np.max()) + 1                               # static, host-side
    token_to_words = jnp.asarray(t2w_np)

    for mode in ("first", "mean", "last"):
        out = subword_pooling(token_embeds, token_to_words, mode, new_len=new_len)
        out = jax.block_until_ready(out)
        ref = _reference(token_embeds, token_to_words, mode, new_len)
        assert out.shape == (B, new_len, E)
        assert jnp.allclose(out, ref.astype(out.dtype), atol=1e-5, rtol=1e-5), \
            f"mismatch for {mode} (aligned f32 case)"

    # --- Config 2: tiny unaligned f32, reduce fallback path -------------------
    B2, S2, E2 = 2, 8, 32
    token_embeds2 = jax.random.normal(jax.random.PRNGKey(0), (B2, S2, E2),
                                      dtype=jnp.float32)
    t2w_list = [[0, 0, 1, 1, 2, 2, 3, 3],
                [0, 1, 1, 2, 3, 3, 3, 4]]
    new_len2 = max(max(row) for row in t2w_list) + 1
    token_to_words2 = jnp.asarray(t2w_list, dtype=jnp.int32)

    for mode in ("first", "mean", "last"):
        out = subword_pooling(token_embeds2, token_to_words2, mode, new_len=new_len2)
        out = jax.block_until_ready(out)
        ref = _reference(token_embeds2, token_to_words2, mode, new_len2)
        assert out.shape == (B2, new_len2, E2)
        assert jnp.allclose(out, ref.astype(out.dtype), atol=1e-5, rtol=1e-5), \
            f"mismatch for {mode} (tiny f32 case)"

    # --- Config 3: bf16, forced E tiling (exercises pl.when + scratch reuse +
    #     batched matmul-only path + post-dot mean scale) ----------------------
    B3, S3, E3 = 2, 128, 512
    token_embeds3 = jax.random.normal(jax.random.PRNGKey(0), (B3, S3, E3),
                                      dtype=jnp.bfloat16)
    t2w3_np = np.stack([np.arange(S3) // 2, np.arange(S3) // 3]).astype(np.int32)
    new_len3 = int(t2w3_np.max()) + 1
    token_to_words3 = jnp.asarray(t2w3_np)

    for mode in ("first", "mean", "last"):
        out = subword_pooling(token_embeds3, token_to_words3, mode,
                              new_len=new_len3, max_e_tile=256)
        out = jax.block_until_ready(out)
        ref = _reference(token_embeds3, token_to_words3, mode, new_len3)
        assert out.shape == (B3, new_len3, E3)
        assert jnp.allclose(out.astype(jnp.float32), ref, atol=5e-2, rtol=5e-2), \
            f"mismatch for {mode} (bf16 tiled case)"

    print("KERNEL_OK")
</pallas_src>

<mosaic_0001>
module attributes {stable_mosaic.version = 11 : i64} {
  func.func @kernel(%arg0: i32, %arg1: i32, %arg2: memref<1x1x128xi32, #tpu.memory_space<vmem>>, %arg3: memref<1x128x1024xf32, #tpu.memory_space<vmem>>, %arg4: memref<1x64x1024xf32, #tpu.memory_space<vmem>>, %arg5: memref<1x64x128xf32, #tpu.memory_space<vmem>>) attributes {dimension_semantics = [#tpu.dimension_semantics<parallel>, #tpu.dimension_semantics<arbitrary>], iteration_bounds = array<i64: 2, 1>, scalar_prefetch = 0 : i64, scratch_operands = 1 : i64, tpu.core_type = #tpu.core_type<tc>, window_params = [{transform_indices = @transform_0, window_bounds = array<i64: 1, 1, 128>}, {transform_indices = @transform_1, window_bounds = array<i64: 1, 128, 1024>}, {transform_indices = @transform_2, window_bounds = array<i64: 1, 64, 1024>}]} {
    %0 = tpu.iota {dimensions = array<i32: 0>} : vector<64x128xi32>
    %1 = tpu.iota {dimensions = array<i32: 1>} : vector<1x128xi32>
    %c0 = arith.constant 0 : index
    %c0_0 = arith.constant 0 : index
    %c0_1 = arith.constant 0 : index
    %2 = vector.load %arg2[%c0, %c0_0, %c0_1] : memref<1x1x128xi32, #tpu.memory_space<vmem>>, vector<1x1x128xi32>
    %3 = vector.shape_cast %2 : vector<1x1x128xi32> to vector<1x128xi32>
    %4 = vector.broadcast %3 : vector<1x128xi32> to vector<64x128xi32>
    %5 = arith.cmpi eq, %0, %4 : vector<64x128xi32>
    %c1_i32 = arith.constant 1 : i32
    %6 = tpu.dynamic_rotate %3 by %c1_i32 dim 1 : vector<1x128xi32>, i32 -> vector<1x128xi32>
    %c0_i32 = arith.constant 0 : i32
    %7 = vector.broadcast %c0_i32 : i32 to vector<1x128xi32>
    %8 = arith.cmpi eq, %1, %7 : vector<1x128xi32>
    %9 = arith.cmpi ne, %3, %6 : vector<1x128xi32>
    %10 = arith.ori %8, %9 : vector<1x128xi1>
    %11 = vector.broadcast %10 : vector<1x128xi1> to vector<64x128xi1>
    %12 = arith.andi %5, %11 : vector<64x128xi1>
    %13 = arith.extui %12 : vector<64x128xi1> to vector<64x128xi32>
    %14 = arith.sitofp %13 : vector<64x128xi32> to vector<64x128xf32>
    %c0_2 = arith.constant 0 : index
    %c0_3 = arith.constant 0 : index
    %c0_4 = arith.constant 0 : index
    %15 = vector.load %arg3[%c0_2, %c0_3, %c0_4] : memref<1x128x1024xf32, #tpu.memory_space<vmem>>, vector<1x128x1024xf32>
    %16 = vector.shape_cast %15 : vector<1x128x1024xf32> to vector<128x1024xf32>
    %cst = arith.constant dense<0.000000e+00> : vector<64x1024xf32>
    %17 = tpu.matmul %14, %16, %cst {dimension_numbers = #tpu.dot_dimension_numbers<[1], [0], [0], [1], [0, 0, 1, 1], [], []>} : vector<64x128xf32>, vector<128x1024xf32>, vector<64x1024xf32> -> vector<64x1024xf32>
    %c0_5 = arith.constant 0 : index
    %c0_6 = arith.constant 0 : index
    %c0_7 = arith.constant 0 : index
    %18 = vector.load %arg4[%c0_5, %c0_6, %c0_7] : memref<1x64x1024xf32, #tpu.memory_space<vmem>>, vector<1x64x1024xf32>
    %19 = vector.shape_cast %18 : vector<1x64x1024xf32> to vector<64x1024xf32>
    %20 = vector.shape_cast %17 : vector<64x1024xf32> to vector<1x64x1024xf32>
    tpu.vector_store %arg4[%c0_5, %c0_6, %c0_7], %20 {strides = array<i32>} : memref<1x64x1024xf32, #tpu.memory_space<vmem>>, vector<1x64x1024xf32>,
    return
  }
  func.func @transform_0(%arg0: i32, %arg1: i32) -> (i32, i32, i32) {
    %c0_i32 = arith.constant 0 : i32
    %c0_i32_0 = arith.constant 0 : i32
    %c0_i32_1 = arith.constant 0 : i32
    return %arg0, %c0_i32, %c0_i32_0 : i32, i32, i32
  }
  func.func @transform_1(%arg0: i32, %arg1: i32) -> (i32, i32, i32) {
    %c0_i32 = arith.constant 0 : i32
    %c0_i32_0 = arith.constant 0 : i32
    return %arg0, %c0_i32, %arg1 : i32, i32, i32
  }
  func.func @transform_2(%arg0: i32, %arg1: i32) -> (i32, i32, i32) {
    %c0_i32 = arith.constant 0 : i32
    %c0_i32_0 = arith.constant 0 : i32
    return %arg0, %c0_i32, %arg1 : i32, i32, i32
  }
}

</mosaic_0001>

<bundles_post_ra>
// kernel: tpu_custom_call.1
= control target key start
LH: loop header
LB: loop body
LE: loop exit
PB: predicated region body
PF: predicated region fallthrough
CT: control target
= control target key end

     0   :  { %7 = vsyncpa [#allocation4], 0  ;;  %s1864_s0 = inlined_call_operand.hbm [shape: s32[2,1,128], index: 0, kind: input, shape index: {}]   ;;  %s1865_s1 = inlined_call_operand.hbm [shape: f32[2,128,1024], index: 1, kind: input, shape index: {}]   ;;  %s1866_s2 = inlined_call_operand.hbm [shape: f32[2,64,1024], index: 2, kind: output, shape index: {}]  }
   0x1   :  { %9 = vsyncpa [#allocation4 + $0x1], 0 }
   0x2   :  { %10 = vsyncpa [#allocation7], 0 }
   0x3   :  { %12 = vsyncpa [#allocation7 + $0x1], 0 }
   0x4   :  { %13 = vsyncpa [#allocation5], 0 }
   0x5   :  { %15 = vsyncpa [#allocation5 + $0x1], 0  ;;  %s1250_s9 = smov 0   ;;  %s1252_s10 = smov 0  }
   0x6   :  { %s1254_s11 = smov 0   ;;  %s1256_s12 = smov 0  }
   0x7   :  { %s1258_s13 = smov 0   ;;  %s1260_s14 = smov 0  }
   0x8 LB: > { %s916_s15 = sadd.s32 4294967295, %s1226_s14   ;;  %s917_s16 = sadd.s32 4294967294, %s1226_s14   ;;  %s1226_s14 = sphi %s1260_s14, %s21_s14   ;;  %s1222_s13 = sphi %s1258_s13, %s1894_s13   ;;  %s1218_s12 = sphi %s1256_s12, %s1893_s12   ;;  %s1214_s11 = sphi %s1254_s11, %s1892_s11   ;;  %s1210_s10 = sphi %s1252_s10, %s1891_s10   ;;  %s1206_s9 = sphi %s1250_s9, %s1890_s9  }
   0x9   : > { %s33_s17 = sadd.s32 1, %s1222_s13  ;;  %s40_s18 = sadd.s32 1, %s1214_s11 }
   0xa   : > { %p35_p0 = scmp.ge.s32.totalorder %s33_s17, 2  ;;  %p47_p1 = scmp.ne.s32.totalorder %s1214_s11, %s1210_s10 }
   0xb   : > { %p48_p2 = scmp.eq.s32.totalorder %s1226_s14, 0  ;;  %p53_p3 = scmp.ne.s32.totalorder %s1210_s10, %s1206_s9 }
   0xc   : > { %s1896_s17 = smov (%p35_p0, %s33_s17), 0  ;;  %p54_p5 = scmp.eq.s32.totalorder %s916_s15, 0 }
   0xd   : > { %p1291_p4 = por %p48_p2, %p47_p1  ;;  %s37_s20 = ssub.s32 %s1222_s13, %s1896_s17 }
   0xe   : > { %p107_p6 = scmp.eq.s32.totalorder %s916_s15, 1  ;;  %p38_p7 = scmp.eq.s32.totalorder %s37_s20, 0 }
   0xf   : > { %p1297_p8 = por %p54_p5, %p53_p3  ;;  %p113_p10 = scmp.eq.s32.totalorder %s917_s16, 1 }
  0x10   : > { %p1301_p9 = por %p107_p6, %p47_p1  ;;  %p919_p12 = scmp.ge.s32.totalorder %s1226_s14, 2 }
  0x11   : > { %s1306_s23 = scalar_select %p38_p7, %s1214_s11, %s40_s18  }
  0x12   : > { %p1308_p11 = por %p113_p10, %p53_p3  ;;  %p1022_p13 = scmp.lt.s32.totalorder %s1226_s14, 2 }
  0x13   : > { %s1315_s25 = sand.u32 1, %s1214_s11   ;;  %s139_s28 = scalar_lea.hbm %s1864_s0, %s1222_s13 }
  0x14   : > { %s136_s29 = scalar_lea.vmem [#allocation3], %s1315_s25  ;;  %s141_s3 = sshll.u32 %s139_s28, 4  ;;  %s142_s3 = int_to_ptr.hbm [resolvable:$true] %s141_s3 }
  0x15   : > { %s143_s30 = sshll.u32 %s136_s29, 4  ;;  %p1324_p0 = pnand %p1022_p13, %p1291_p4  ;;  %s144_s30 = int_to_ptr.vmem [resolvable:$true] %s143_s30 }
  0x16   : > { %p923_p1 = scmp.ge.s32.totalorder %s1226_s14, 1  ;;  %p172_p2 = scmp.lt.s32.totalorder %s1226_s14, 3 }
  0x17   : > { %s134_s5 = scalar_lea.sflag [#allocation4], %s1315_s25  ;;  %s920_s6 = sshll.u32 %s1315_s25, 10 }
  0x18   : > { %1014 = dma.hbm_to_vmem [thread:$0]  (!%p1324_p0), %s142_s3, 16, %s144_s30, %s134_s5  }
  0x19   : > { %p173_p3 = pnand %p923_p1, %p172_p2  ;;  %s1003_s7 = sshll.u32 %s1222_s13, 10 }
  0x1a   : > { %s161_s16 = scalar_lea.hbm %s1865_s1, %s1003_s7  ;;  %s154_s18 = scalar_lea.vmem [#allocation6], %s920_s6 }
  0x1b   : > { %s164_s19 = sshll.u32 %s154_s18, 4  ;;  %s162_s20 = sshll.u32 %s161_s16, 4  ;;  %s165_s19 = int_to_ptr.vmem [resolvable:$true] %s164_s19  ;;  %s163_s20 = int_to_ptr.hbm [resolvable:$true] %s162_s20 }
  0x1c   : > { %s151_s26 = scalar_lea.sflag [#allocation7], %s1315_s25  ;;  %s1228_s27 = smov 1024  }
  0x1d   : > { %s1229_s28 = smov 64   ;;  %176 = sbr.rel (%p173_p3) target bundleno = 419 (0x1a3), region = 28 }
  0x1e   : > { %1017 = dma.hbm_to_vmem [thread:$0]  (!%p1324_p0), %s163_s20, 16384, %s165_s19, %s151_s26, %s1228_s27, %s1228_s27, %s1229_s28  }
  0x1f   : > { %s1342_s29 = sand.u32 (!%p173_p3), 1, %s1210_s10  }
  0x20   : > { %s179_s30 = scalar_lea.sflag (!%p173_p3), [#allocation4], %s1342_s29  ;;  %s181_s3 = scalar_lea.vmem (!%p173_p3), [#allocation3], %s1342_s29 }
  0x22   : > { %1193 = dma.done.wait (%p1297_p8), %s179_s30, 16  }
  0x23   : > { %1195 = vsyncadd (%p1297_p8), %s179_s30, 4294967280  ;;  %s924_s25 = sshll.u32 %s1342_s29, 10  ;;  %s188_s4 = scalar_lea.sflag [#allocation7], %s1342_s29 }
  0x24   : > { %s1352_s5 = scalar_lea.vmem [#allocation6], %s924_s25 }
  0x25   : > { %1197 = dma.done.wait (%p1297_p8), %s188_s4, 16384  }
  0x26   : > { %1199 = vsyncadd (%p1297_p8), %s188_s4, 4294950912  ;;  %v1360_v0 = vld [vmem:[%s181_s3] sm:$0x1]  ;;  %v392_v1 = vld [vmem:[%s1352_s5 + $0x3c0] sm:$0xff]  ;;  %s1230_s6 = smov 1   ;;  %s925_s21 = sshll.u32 %s1342_s29, 9 }
  0x27   : > { %240 = vrot.lane.b32.xlu0 %v1360_v0, %s1230_s6  ;;  %400 = vmatpush.msra.mxu0 %v392_v1  ;;  %v393_v2 = vld [vmem:[%s1352_s5 + $0x3c8] sm:$0xff]  ;;  %v394_v3 = vld [vmem:[%s1352_s5 + $0x3d0] sm:$0xff]  ;;  %v395_v4 = vld [vmem:[%s1352_s5 + $0x3d8] sm:$0xff]  ;;  %s1759_s7 = scalar_lea.vmem [#allocation8], %s925_s21  ;;  %s1004_s8 = sshll.u32 %s1218_s12, 9 }
  0x28   : > { %441 = vmatpush.msra.mxu1 %v393_v2  ;;  %482 = vmatpush.msra.mxu2 %v394_v3  ;;  %v384_v5 = vld [vmem:[%s1352_s5 + $0x380] sm:$0xff]  ;;  %v385_v6 = vld [vmem:[%s1352_s5 + $0x388] sm:$0xff]  ;;  %v386_v7 = vld [vmem:[%s1352_s5 + $0x390] sm:$0xff]  ;;  %s806_s18 = scalar_lea.hbm %s1866_s2, %s1004_s8  ;;  %s807_s19 = sshll.u32 %s1759_s7, 4  ;;  %s808_s19 = int_to_ptr.vmem [resolvable:$true] %s807_s19 }
  0x29   : > { %523 = vmatpush.msra.mxu3 %v395_v4  ;;  %401 = vmatpush.msra.mxu0 %v384_v5  ;;  %v387_v8 = vld [vmem:[%s1352_s5 + $0x398] sm:$0xff]  ;;  %v376_v9 = vld [vmem:[%s1352_s5 + $0x340] sm:$0xff]  ;;  %v377_v10 = vld [vmem:[%s1352_s5 + $0x348] sm:$0xff]  ;;  %s809_s20 = sshll.u32 %s806_s18, 4  ;;  %s793_s12 = scalar_lea.sflag [#allocation5], %s1342_s29  ;;  %s810_s20 = int_to_ptr.hbm [resolvable:$true] %s809_s20 }
  0x2a   : > { %442 = vmatpush.msra.mxu1 %v385_v6  ;;  %483 = vmatpush.msra.mxu2 %v386_v7  ;;  %v378_v11 = vld [vmem:[%s1352_s5 + $0x350] sm:$0xff]  ;;  %v379_v12 = vld [vmem:[%s1352_s5 + $0x358] sm:$0xff]  ;;  %v368_v13 = vld [vmem:[%s1352_s5 + $0x300] sm:$0xff]  ;;  %s1154_s26 = sshra.s32 %s810_s20, 4  ;;  %s1155_s26 = int_to_ptr.hbm [resolvable:$true] %s1154_s26 }
  0x2b   : > { %524 = vmatpush.msra.mxu3 %v387_v8  ;;  %402 = vmatpush.msra.mxu0 %v376_v9  ;;  %v369_v14 = vld [vmem:[%s1352_s5 + $0x308] sm:$0xff]  ;;  %v370_v15 = vld [vmem:[%s1352_s5 + $0x310] sm:$0xff]  ;;  %v371_v16 = vld [vmem:[%s1352_s5 + $0x318] sm:$0xff]  ;;  %s1156_s27 = scalar_lea.hbm %s1155_s26, 512  ;;  %p1161_p7 = scmp.lt.s32.totalorder %s1155_s26, %s1866_s2 }
  0x2c   : > { %443 = vmatpush.msra.mxu1 %v377_v10  ;;  %484 = vmatpush.msra.mxu2 %v378_v11  ;;  %v360_v17 = vld [vmem:[%s1352_s5 + $0x2c0] sm:$0xff]  ;;  %v361_v18 = vld [vmem:[%s1352_s5 + $0x2c8] sm:$0xff]  ;;  %v362_v19 = vld [vmem:[%s1352_s5 + $0x2d0] sm:$0xff]  ;;  %p1157_p4 = scmp.ne.s32.totalorder %s1155_s26, %s1156_s27 }
  0x2d   : > { %525 = vmatpush.msra.mxu3 %v379_v12  ;;  %403 = vmatpush.msra.mxu0 %v368_v13  ;;  %v363_v20 = vld [vmem:[%s1352_s5 + $0x2d8] sm:$0xff]  ;;  %v352_v21 = vld [vmem:[%s1352_s5 + $0x280] sm:$0xff]  ;;  %v353_v22 = vld [vmem:[%s1352_s5 + $0x288] sm:$0xff] }
  0x2e   : > { %444 = vmatpush.msra.mxu1 %v369_v14  ;;  %485 = vmatpush.msra.mxu2 %v370_v15  ;;  %v354_v23 = vld [vmem:[%s1352_s5 + $0x290] sm:$0xff]  ;;  %v355_v24 = vld [vmem:[%s1352_s5 + $0x298] sm:$0xff]  ;;  %v344_v25 = vld [vmem:[%s1352_s5 + $0x240] sm:$0xff]  ;;  %p1158_p5 = pnand %p1157_p4, %p1301_p9 }
  0x2f   : > { %526 = vmatpush.msra.mxu3 %v371_v16  ;;  %404 = vmatpush.msra.mxu0 %v360_v17  ;;  %v345_v26 = vld [vmem:[%s1352_s5 + $0x248] sm:$0xff]  ;;  %v346_v27 = vld [vmem:[%s1352_s5 + $0x250] sm:$0xff]  ;;  %v347_v28 = vld [vmem:[%s1352_s5 + $0x258] sm:$0xff]  ;;  %v219_v16 = vlaneseq }
  0x30   : > { %445 = vmatpush.msra.mxu1 %v361_v18  ;;  %486 = vmatpush.msra.mxu2 %v362_v19  ;;  %v336_v29 = vld [vmem:[%s1352_s5 + $0x200] sm:$0xff]  ;;  %v337_v30 = vld [vmem:[%s1352_s5 + $0x208] sm:$0xff]  ;;  %v338_v31 = vld [vmem:[%s1352_s5 + $0x210] sm:$0xff]  ;;  %p1159_p6 = pneg %p1158_p5 }
  0x31   : > { %527 = vmatpush.msra.mxu3 %v363_v20  ;;  %405 = vmatpush.msra.mxu0 %v352_v21  ;;  %v339_v32 = vld [vmem:[%s1352_s5 + $0x218] sm:$0xff]  ;;  %v328_v33 = vld [vmem:[%s1352_s5 + $0x1c0] sm:$0xff]  ;;  %v329_v34 = vld [vmem:[%s1352_s5 + $0x1c8] sm:$0xff] }
  0x32   : > { %446 = vmatpush.msra.mxu1 %v353_v22  ;;  %487 = vmatpush.msra.mxu2 %v354_v23  ;;  %v330_v35 = vld [vmem:[%s1352_s5 + $0x1d0] sm:$0xff]  ;;  %v331_v36 = vld [vmem:[%s1352_s5 + $0x1d8] sm:$0xff]  ;;  %v320_v37 = vld [vmem:[%s1352_s5 + $0x180] sm:$0xff]  ;;  %v229_v23 = vand.u32 127, %v219_v16 }
  0x33   : > { %528 = vmatpush.msra.mxu3 %v355_v24  ;;  %406 = vmatpush.msra.mxu0 %v344_v25  ;;  %v321_v38 = vld [vmem:[%s1352_s5 + $0x188] sm:$0xff]  ;;  %v322_v39 = vld [vmem:[%s1352_s5 + $0x190] sm:$0xff]  ;;  %v323_v40 = vld [vmem:[%s1352_s5 + $0x198] sm:$0xff] }
  0x34   : > { %447 = vmatpush.msra.mxu1 %v345_v26  ;;  %488 = vmatpush.msra.mxu2 %v346_v27  ;;  %v312_v41 = vld [vmem:[%s1352_s5 + $0x140] sm:$0xff]  ;;  %v313_v42 = vld [vmem:[%s1352_s5 + $0x148] sm:$0xff]  ;;  %v314_v43 = vld [vmem:[%s1352_s5 + $0x150] sm:$0xff]  ;;  %vm242_vm0 = vcmp.eq.s32.totalorder %v229_v23, 0 }
  0x35   : > { %529 = vmatpush.msra.mxu3 %v347_v28  ;;  %407 = vmatpush.msra.mxu0 %v336_v29  ;;  %v315_v44 = vld [vmem:[%s1352_s5 + $0x158] sm:$0xff]  ;;  %v304_v45 = vld [vmem:[%s1352_s5 + $0x100] sm:$0xff]  ;;  %v305_v46 = vld [vmem:[%s1352_s5 + $0x108] sm:$0xff] }
  0x36   : > { %448 = vmatpush.msra.mxu1 %v337_v30  ;;  %489 = vmatpush.msra.mxu2 %v338_v31  ;;  %v306_v47 = vld [vmem:[%s1352_s5 + $0x110] sm:$0xff]  ;;  %v307_v48 = vld [vmem:[%s1352_s5 + $0x118] sm:$0xff]  ;;  %v296_v49 = vld [vmem:[%s1352_s5 + $0xc0] sm:$0xff]  ;;  %v1457_v31 = vshrl.u32 %v219_v16, 7 }
  0x37   : > { %530 = vmatpush.msra.mxu3 %v339_v32  ;;  %408 = vmatpush.msra.mxu0 %v328_v33  ;;  %v297_v50 = vld [vmem:[%s1352_s5 + $0xc8] sm:$0xff]  ;;  %v298_v51 = vld [vmem:[%s1352_s5 + $0xd0] sm:$0xff]  ;;  %v299_v52 = vld [vmem:[%s1352_s5 + $0xd8] sm:$0xff] }
  0x38   : > { %449 = vmatpush.msra.mxu1 %v329_v34  ;;  %490 = vmatpush.msra.mxu2 %v330_v35  ;;  %v288_v53 = vld [vmem:[%s1352_s5 + $0x80] sm:$0xff]  ;;  %v289_v54 = vld [vmem:[%s1352_s5 + $0x88] sm:$0xff]  ;;  %v290_v55 = vld [vmem:[%s1352_s5 + $0x90] sm:$0xff]  ;;  %v1231_v34 = vmov 0   ;;  %v226_v23 = vadd.s32 48, %v1457_v31 }
  0x39   : > { %531 = vmatpush.msra.mxu3 %v331_v36  ;;  %409 = vmatpush.msra.mxu0 %v320_v37  ;;  %v291_v56 = vld [vmem:[%s1352_s5 + $0x98] sm:$0xff]  ;;  %v280_v57 = vld [vmem:[%s1352_s5 + $0x40] sm:$0xff]  ;;  %v281_v58 = vld [vmem:[%s1352_s5 + $0x48] sm:$0xff] }
  0x3a   : > { %450 = vmatpush.msra.mxu1 %v321_v38  ;;  %491 = vmatpush.msra.mxu2 %v322_v39  ;;  %v282_v59 = vld [vmem:[%s1352_s5 + $0x50] sm:$0xff]  ;;  %v283_v60 = vld [vmem:[%s1352_s5 + $0x58] sm:$0xff]  ;;  %v272_v61 = vld [vmem:[%s1352_s5] sm:$0xff] }
  0x3b   : > { %532 = vmatpush.msra.mxu3 %v323_v40  ;;  %410 = vmatpush.msra.mxu0 %v312_v41  ;;  %v273_v62 = vld [vmem:[%s1352_s5 + $0x8] sm:$0xff]  ;;  %v274_v63 = vld [vmem:[%s1352_s5 + $0x10] sm:$0xff]  ;;  %v275_v1 = vld [vmem:[%s1352_s5 + $0x18] sm:$0xff]  ;;  %v1232_v41 = vmov 1.0  }
  0x3c   : > { %451 = vmatpush.msra.mxu1 %v313_v42  ;;  %492 = vmatpush.msra.mxu2 %v314_v43  ;;  %v398_v2 = vld [vmem:[%s1352_s5 + $0x3f0] sm:$0xff]  ;;  %v399_v3 = vld [vmem:[%s1352_s5 + $0x3f8] sm:$0xff]  ;;  %v396_v6 = vld [vmem:[%s1352_s5 + $0x3e0] sm:$0xff]  ;;  %v221_v42 = vadd.s32 8, %v1457_v31 }
  0x3d   : > { %533 = vmatpush.msra.mxu3 %v315_v44  ;;  %411 = vmatpush.msra.mxu0 %v304_v45  ;;  %v390_v4 = vld [vmem:[%s1352_s5 + $0x3b0] sm:$0xff]  ;;  %v391_v5 = vld [vmem:[%s1352_s5 + $0x3b8] sm:$0xff]  ;;  %v397_v7 = vld [vmem:[%s1352_s5 + $0x3e8] sm:$0xff] }
  0x3e   : > { %452 = vmatpush.msra.mxu1 %v305_v46  ;;  %493 = vmatpush.msra.mxu2 %v306_v47  ;;  %v382_v8 = vld [vmem:[%s1352_s5 + $0x370] sm:$0xff]  ;;  %v383_v9 = vld [vmem:[%s1352_s5 + $0x378] sm:$0xff]  ;;  %v388_v10 = vld [vmem:[%s1352_s5 + $0x3a0] sm:$0xff] }
  0x3f   : > { %534 = vmatpush.msra.mxu3 %v307_v48  ;;  %412 = vmatpush.msra.mxu0 %v296_v49  ;;  %v389_v11 = vld [vmem:[%s1352_s5 + $0x3a8] sm:$0xff]  ;;  %v374_v12 = vld [vmem:[%s1352_s5 + $0x330] sm:$0xff]  ;;  %v375_v13 = vld [vmem:[%s1352_s5 + $0x338] sm:$0xff] }
  0x40   : > { %453 = vmatpush.msra.mxu1 %v297_v50  ;;  %494 = vmatpush.msra.mxu2 %v298_v51  ;;  %v380_v14 = vld [vmem:[%s1352_s5 + $0x360] sm:$0xff]  ;;  %v381_v15 = vld [vmem:[%s1352_s5 + $0x368] sm:$0xff]  ;;  %v366_v17 = vld [vmem:[%s1352_s5 + $0x2f0] sm:$0xff] }
  0x41   : > { %535 = vmatpush.msra.mxu3 %v299_v52  ;;  %413 = vmatpush.msra.mxu0 %v288_v53  ;;  %v367_v18 = vld [vmem:[%s1352_s5 + $0x2f8] sm:$0xff]  ;;  %v372_v19 = vld [vmem:[%s1352_s5 + $0x320] sm:$0xff]  ;;  %v373_v20 = vld [vmem:[%s1352_s5 + $0x328] sm:$0xff]  ;;  %v222_v52 = vadd.s32 16, %v1457_v31 }
  0x42   : > { %454 = vmatpush.msra.mxu1 %v289_v54  ;;  %495 = vmatpush.msra.mxu2 %v290_v55  ;;  %v358_v21 = vld [vmem:[%s1352_s5 + $0x2b0] sm:$0xff]  ;;  %v359_v22 = vld [vmem:[%s1352_s5 + $0x2b8] sm:$0xff]  ;;  %v364_v24 = vld [vmem:[%s1352_s5 + $0x2e0] sm:$0xff] }
  0x43   : > { %536 = vmatpush.msra.mxu3 %v291_v56  ;;  %414 = vmatpush.msra.mxu0 %v280_v57  ;;  %v365_v25 = vld [vmem:[%s1352_s5 + $0x2e8] sm:$0xff]  ;;  %v1451_v26 = vld [vmem:[%s181_s3] ss:$0 sm:$0xff]  ;;  %v350_v28 = vld [vmem:[%s1352_s5 + $0x270] sm:$0xff]  ;;  %s1160_s3 = scalar_lea.hbm %s1866_s2, 1024 }
  0x44   : > { %455 = vmatpush.msra.mxu1 %v281_v58  ;;  %496 = vmatpush.msra.mxu2 %v282_v59  ;;  %v351_v29 = vld [vmem:[%s1352_s5 + $0x278] sm:$0xff]  ;;  %v356_v30 = vld [vmem:[%s1352_s5 + $0x2a0] sm:$0xff]  ;;  %v357_v32 = vld [vmem:[%s1352_s5 + $0x2a8] sm:$0xff]  ;;  %vm232_vm3 = vcmp.eq.s32.totalorder %v1457_v31, %v1451_v26  ;;  %vm233_vm6 = vcmp.eq.s32.totalorder %v221_v42, %v1451_v26  ;;  %vm234_vm8 = vcmp.eq.s32.totalorder %v222_v52, %v1451_v26  ;;  %p1162_p8 = scmp.lt.s32.totalorder %s1160_s3, %s1156_s27 }
  0x45   : > { %537 = vmatpush.msra.mxu3 %v283_v60  ;;  %415 = vmatpush.msra.mxu0 %v272_v61  ;;  %v342_v33 = vld [vmem:[%s1352_s5 + $0x230] sm:$0xff]  ;;  %v343_v36 = vld [vmem:[%s1352_s5 + $0x238] sm:$0xff]  ;;  %v348_v37 = vld [vmem:[%s1352_s5 + $0x260] sm:$0xff] }
  0x46   : > { %456 = vmatpush.msra.mxu1 %v273_v62  ;;  %497 = vmatpush.msra.mxu2 %v274_v63  ;;  %v349_v38 = vld [vmem:[%s1352_s5 + $0x268] sm:$0xff]  ;;  %v334_v43 = vld [vmem:[%s1352_s5 + $0x1f0] sm:$0xff]  ;;  %v335_v44 = vld [vmem:[%s1352_s5 + $0x1f8] sm:$0xff]  ;;  %v223_v62 = vadd.s32 24, %v1457_v31  ;;  %p1163_p10 = por %p1162_p8, %p1161_p7 }
  0x47   : > { %538 = vmatpush.msra.mxu3 %v275_v1  ;;  %564 = vmatpush.msrb.mxu0 %v396_v6  ;;  %v340_v45 = vld [vmem:[%s1352_s5 + $0x220] sm:$0xff]  ;;  %v341_v46 = vld [vmem:[%s1352_s5 + $0x228] sm:$0xff]  ;;  %v326_v47 = vld [vmem:[%s1352_s5 + $0x1b0] sm:$0xff] }
  0x48   : > { %646 = vmatpush.msrb.mxu2 %v398_v2  ;;  %605 = vmatpush.msrb.mxu1 %v397_v7  ;;  %v327_v48 = vld [vmem:[%s1352_s5 + $0x1b8] sm:$0xff]  ;;  %v332_v49 = vld [vmem:[%s1352_s5 + $0x1e0] sm:$0xff]  ;;  %v333_v50 = vld [vmem:[%s1352_s5 + $0x1e8] sm:$0xff]  ;;  %vm235_vm10 = vcmp.eq.s32.totalorder %v223_v62, %v1451_v26  ;;  %p1164_p13 = pnand %p1163_p10, %p1159_p6 }
  0x49   : > { %687 = vmatpush.msrb.mxu3 %v399_v3  ;;  %565 = vmatpush.msrb.mxu0 %v388_v10  ;;  %v318_v53 = vld [vmem:[%s1352_s5 + $0x170] sm:$0xff]  ;;  %v319_v54 = vld [vmem:[%s1352_s5 + $0x178] sm:$0xff]  ;;  %v324_v55 = vld [vmem:[%s1352_s5 + $0x1a0] sm:$0xff] }
  0x4a   : > { %647 = vmatpush.msrb.mxu2 %v390_v4  ;;  %606 = vmatpush.msrb.mxu1 %v389_v11  ;;  %v325_v56 = vld [vmem:[%s1352_s5 + $0x1a8] sm:$0xff]  ;;  %v310_v57 = vld [vmem:[%s1352_s5 + $0x130] sm:$0xff]  ;;  %v311_v58 = vld [vmem:[%s1352_s5 + $0x138] sm:$0xff] }
  0x4b   : > { %688 = vmatpush.msrb.mxu3 %v391_v5  ;;  %566 = vmatpush.msrb.mxu0 %v380_v14  ;;  %v316_v59 = vld [vmem:[%s1352_s5 + $0x160] sm:$0xff]  ;;  %v317_v60 = vld [vmem:[%s1352_s5 + $0x168] sm:$0xff]  ;;  %v302_v63 = vld [vmem:[%s1352_s5 + $0xf0] sm:$0xff] }
  0x4c   : > { %648 = vmatpush.msrb.mxu2 %v382_v8  ;;  %607 = vmatpush.msrb.mxu1 %v381_v15  ;;  %v303_v1 = vld [vmem:[%s1352_s5 + $0xf8] sm:$0xff]  ;;  %v308_v2 = vld [vmem:[%s1352_s5 + $0x120] sm:$0xff]  ;;  %v309_v3 = vld [vmem:[%s1352_s5 + $0x128] sm:$0xff] }
  0x4d   : > { %689 = vmatpush.msrb.mxu3 %v383_v9  ;;  %567 = vmatpush.msrb.mxu0 %v372_v19  ;;  %v294_v4 = vld [vmem:[%s1352_s5 + $0xb0] sm:$0xff]  ;;  %v295_v5 = vld [vmem:[%s1352_s5 + $0xb8] sm:$0xff]  ;;  %v300_v6 = vld [vmem:[%s1352_s5 + $0xe0] sm:$0xff]  ;;  %v224_v9 = vadd.s32 32, %v1457_v31 }
  0x4e   : > { %649 = vmatpush.msrb.mxu2 %v374_v12  ;;  %608 = vmatpush.msrb.mxu1 %v373_v20  ;;  %v301_v7 = vld [vmem:[%s1352_s5 + $0xe8] sm:$0xff]  ;;  %v286_v10 = vld [vmem:[%s1352_s5 + $0x70] sm:$0xff]  ;;  %v287_v11 = vld [vmem:[%s1352_s5 + $0x78] sm:$0xff] }
  0x4f   : > { %690 = vmatpush.msrb.mxu3 %v375_v13  ;;  %568 = vmatpush.msrb.mxu0 %v364_v24  ;;  %v292_v12 = vld [vmem:[%s1352_s5 + $0xa0] sm:$0xff]  ;;  %v293_v13 = vld [vmem:[%s1352_s5 + $0xa8] sm:$0xff]  ;;  %v278_v14 = vld [vmem:[%s1352_s5 + $0x30] sm:$0xff]  ;;  %vm236_vm12 = vcmp.eq.s32.totalorder %v224_v9, %v1451_v26 }
  0x50   : > { %650 = vmatpush.msrb.mxu2 %v366_v17  ;;  %609 = vmatpush.msrb.mxu1 %v365_v25  ;;  %v279_v15 = vld [vmem:[%s1352_s5 + $0x38] sm:$0xff]  ;;  %v284_v16 = vld [vmem:[%s1352_s5 + $0x60] sm:$0xff]  ;;  %v285_v17 = vld [vmem:[%s1352_s5 + $0x68] sm:$0xff]  ;;  %v227_v25 = vadd.s32 56, %v1457_v31 }
  0x51   : > { %691 = vmatpush.msrb.mxu3 %v367_v18  ;;  %569 = vmatpush.msrb.mxu0 %v356_v30  ;;  %v276_v18 = vld [vmem:[%s1352_s5 + $0x20] sm:$0xff]  ;;  %v277_v19 = vld [vmem:[%s1352_s5 + $0x28] sm:$0xff] }
  0x52   : > { %651 = vmatpush.msrb.mxu2 %v358_v21  ;;  %610 = vmatpush.msrb.mxu1 %v357_v32  ;;  %v225_v21 = vadd.s32 40, %v1457_v31 }
  0x53   : > { %692 = vmatpush.msrb.mxu3 %v359_v22  ;;  %570 = vmatpush.msrb.mxu0 %v348_v37 }
  0x54   : > { %652 = vmatpush.msrb.mxu2 %v350_v28  ;;  %611 = vmatpush.msrb.mxu1 %v349_v38  ;;  %vm237_vm14 = vcmp.eq.s32.totalorder %v225_v21, %v1451_v26 }
  0x55   : > { %693 = vmatpush.msrb.mxu3 %v351_v29  ;;  %571 = vmatpush.msrb.mxu0 %v340_v45 }
  0x56   : > { %653 = vmatpush.msrb.mxu2 %v342_v33  ;;  %612 = vmatpush.msrb.mxu1 %v341_v46 }
  0x57   : > { %694 = vmatpush.msrb.mxu3 %v343_v36  ;;  %572 = vmatpush.msrb.mxu0 %v332_v49 }
  0x58   : > { %654 = vmatpush.msrb.mxu2 %v334_v43  ;;  %613 = vmatpush.msrb.mxu1 %v333_v50 }
  0x59   : > { %695 = vmatpush.msrb.mxu3 %v335_v44  ;;  %573 = vmatpush.msrb.mxu0 %v324_v55 }
  0x5a   : > { %655 = vmatpush.msrb.mxu2 %v326_v47  ;;  %614 = vmatpush.msrb.mxu1 %v325_v56 }
  0x5b   : > { %696 = vmatpush.msrb.mxu3 %v327_v48  ;;  %574 = vmatpush.msrb.mxu0 %v316_v59 }
  0x5c   : > { %656 = vmatpush.msrb.mxu2 %v318_v53  ;;  %615 = vmatpush.msrb.mxu1 %v317_v60 }
  0x5d   : > { %697 = vmatpush.msrb.mxu3 %v319_v54  ;;  %575 = vmatpush.msrb.mxu0 %v308_v2 }
  0x5e   : > { %657 = vmatpush.msrb.mxu2 %v310_v57  ;;  %616 = vmatpush.msrb.mxu1 %v309_v3 }
  0x5f   : > { %698 = vmatpush.msrb.mxu3 %v311_v58  ;;  %576 = vmatpush.msrb.mxu0 %v300_v6 }
  0x60   : > { %658 = vmatpush.msrb.mxu2 %v302_v63  ;;  %617 = vmatpush.msrb.mxu1 %v301_v7 }
  0x61   : > { %699 = vmatpush.msrb.mxu3 %v303_v1  ;;  %577 = vmatpush.msrb.mxu0 %v292_v12 }
  0x62   : > { %659 = vmatpush.msrb.mxu2 %v294_v4  ;;  %618 = vmatpush.msrb.mxu1 %v293_v13 }
  0x63   : > { %700 = vmatpush.msrb.mxu3 %v295_v5  ;;  %578 = vmatpush.msrb.mxu0 %v284_v16 }
  0x64   : > { %660 = vmatpush.msrb.mxu2 %v286_v10  ;;  %619 = vmatpush.msrb.mxu1 %v285_v17 }
  0x65   : > { %701 = vmatpush.msrb.mxu3 %v287_v11  ;;  %579 = vmatpush.msrb.mxu0 %v276_v18 }
  0x66   : > { %661 = vmatpush.msrb.mxu2 %v278_v14  ;;  %620 = vmatpush.msrb.mxu1 %v277_v19 }
  0x67   : > { %702 = vmatpush.msrb.mxu3 %v279_v15 }
  0x99   : > { %v241_v27 = vpop.permute.xlu0 %240 }
  0x9a   : > { %vm243_vm1 = vcmp.ne.s32.totalorder %v1360_v0, %v241_v27 }
  0x9b   : > { %vm244_vm2 = vmor %vm242_vm0, %vm243_vm1  ;;  %vm238_vm0 = vcmp.eq.s32.totalorder %v226_v23, %v1451_v26 }
  0x9c   : > { %v245_v35 = vsel %vm244_vm2, 1, %v1231_v34  ;;  %vm239_vm2 = vcmp.eq.s32.totalorder %v227_v25, %v1451_v26 }
  0x9d   : > { %v246_v0 = vperm.slane %v245_v35, 0 }
  0x9f   : > { %vm1466_vm4 = vcmp.eq.s32.totalorder %v246_v0, 1 }
  0xa0   : > { %vm1472_vm5 = vmand %vm232_vm3, %vm1466_vm4 }
  0xa1   : > { %934 = vmatmul.msk.f32.vlgmr.msra.gmra.mxu0 %vm1472_vm5, %v1232_v41  ;;  %942 = vmatmul.msk.f32.vlgmr.msra.gmra.mxu1 %vm1472_vm5, %v1232_v41  ;;  %vm1500_vm7 = vmand %vm233_vm6, %vm1466_vm4 }
  0xa2   : > { %950 = vmatmul.msk.f32.vlgmr.msra.gmra.mxu2 %vm1472_vm5, %v1232_v41  ;;  %958 = vmatmul.msk.f32.vlgmr.msra.gmra.mxu3 %vm1472_vm5, %v1232_v41  ;;  %vm1528_vm9 = vmand %vm234_vm8, %vm1466_vm4 }
  0xa3   : > { %vm1556_vm11 = vmand %vm235_vm10, %vm1466_vm4 }
  0xa4   : > { %vm1586_vm13 = vmand %vm236_vm12, %vm1466_vm4 }
  0xa5   : > { %vm1606_vm15 = vmand %vm237_vm14, %vm1466_vm4 }
  0xa6   : > { %vm1626_vm1 = vmand %vm238_vm0, %vm1466_vm4 }
  0xa7   : > { %vm1646_vm3 = vmand %vm239_vm2, %vm1466_vm4 }
  0xa9   : > { %935 = vmatmul.msk.f32.gmra.mxu0 %vm1500_vm7, %v1232_v41  ;;  %943 = vmatmul.msk.f32.gmra.mxu1 %vm1500_vm7, %v1232_v41 }
  0xaa   : > { %951 = vmatmul.msk.f32.gmra.mxu2 %vm1500_vm7, %v1232_v41  ;;  %959 = vmatmul.msk.f32.gmra.mxu3 %vm1500_vm7, %v1232_v41 }
  0xb1   : > { %936 = vmatmul.msk.f32.gmra.mxu0 %vm1528_vm9, %v1232_v41  ;;  %944 = vmatmul.msk.f32.gmra.mxu1 %vm1528_vm9, %v1232_v41 }
  0xb2   : > { %952 = vmatmul.msk.f32.gmra.mxu2 %vm1528_vm9, %v1232_v41  ;;  %960 = vmatmul.msk.f32.gmra.mxu3 %vm1528_vm9, %v1232_v41 }
  0xb9   : > { %937 = vmatmul.msk.f32.gmra.mxu0 %vm1556_vm11, %v1232_v41  ;;  %945 = vmatmul.msk.f32.gmra.mxu1 %vm1556_vm11, %v1232_v41 }
  0xba   : > { %953 = vmatmul.msk.f32.gmra.mxu2 %vm1556_vm11, %v1232_v41  ;;  %961 = vmatmul.msk.f32.gmra.mxu3 %vm1556_vm11, %v1232_v41 }
  0xc1   : > { %938 = vmatmul.msk.f32.gmra.mxu0 %vm1586_vm13, %v1232_v41  ;;  %946 = vmatmul.msk.f32.gmra.mxu1 %vm1586_vm13, %v1232_v41 }
  0xc2   : > { %954 = vmatmul.msk.f32.gmra.mxu2 %vm1586_vm13, %v1232_v41  ;;  %962 = vmatmul.msk.f32.gmra.mxu3 %vm1586_vm13, %v1232_v41 }
  0xc9   : > { %939 = vmatmul.msk.f32.gmra.mxu0 %vm1606_vm15, %v1232_v41  ;;  %947 = vmatmul.msk.f32.gmra.mxu1 %vm1606_vm15, %v1232_v41 }
  0xca   : > { %955 = vmatmul.msk.f32.gmra.mxu2 %vm1606_vm15, %v1232_v41  ;;  %963 = vmatmul.msk.f32.gmra.mxu3 %vm1606_vm15, %v1232_v41 }
  0xd1   : > { %940 = vmatmul.msk.f32.gmra.mxu0 %vm1626_vm1, %v1232_v41  ;;  %948 = vmatmul.msk.f32.gmra.mxu1 %vm1626_vm1, %v1232_v41 }
  0xd2   : > { %956 = vmatmul.msk.f32.gmra.mxu2 %vm1626_vm1, %v1232_v41  ;;  %964 = vmatmul.msk.f32.gmra.mxu3 %vm1626_vm1, %v1232_v41 }
  0xd9   : > { %941 = vmatmul.msk.f32.gmra.mxu0 %vm1646_vm3, %v1232_v41  ;;  %949 = vmatmul.msk.f32.gmra.mxu1 %vm1646_vm3, %v1232_v41 }
  0xda   : > { %957 = vmatmul.msk.f32.gmra.mxu2 %vm1646_vm3, %v1232_v41  ;;  %965 = vmatmul.msk.f32.gmra.mxu3 %vm1646_vm3, %v1232_v41 }
  0xe1   : > { %966 = vmatmul.msk.f32.vlgmr.msrb.gmra.mxu0 %vm1472_vm5, %v1232_v41  ;;  %974 = vmatmul.msk.f32.vlgmr.msrb.gmra.mxu1 %vm1472_vm5, %v1232_v41 }
  0xe2   : > { %982 = vmatmul.msk.f32.vlgmr.msrb.gmra.mxu2 %vm1472_vm5, %v1232_v41  ;;  %990 = vmatmul.msk.f32.vlgmr.msrb.gmra.mxu3 %vm1472_vm5, %v1232_v41 }
  0xe9   : > { %967 = vmatmul.msk.f32.gmra.mxu0 %vm1500_vm7, %v1232_v41  ;;  %975 = vmatmul.msk.f32.gmra.mxu1 %vm1500_vm7, %v1232_v41 }
  0xea   : > { %983 = vmatmul.msk.f32.gmra.mxu2 %vm1500_vm7, %v1232_v41  ;;  %991 = vmatmul.msk.f32.gmra.mxu3 %vm1500_vm7, %v1232_v41 }
  0xf1   : > { %968 = vmatmul.msk.f32.gmra.mxu0 %vm1528_vm9, %v1232_v41  ;;  %976 = vmatmul.msk.f32.gmra.mxu1 %vm1528_vm9, %v1232_v41 }
  0xf2   : > { %984 = vmatmul.msk.f32.gmra.mxu2 %vm1528_vm9, %v1232_v41  ;;  %992 = vmatmul.msk.f32.gmra.mxu3 %vm1528_vm9, %v1232_v41 }
  0xf9   : > { %969 = vmatmul.msk.f32.gmra.mxu0 %vm1556_vm11, %v1232_v41  ;;  %977 = vmatmul.msk.f32.gmra.mxu1 %vm1556_vm11, %v1232_v41 }
  0xfa   : > { %985 = vmatmul.msk.f32.gmra.mxu2 %vm1556_vm11, %v1232_v41  ;;  %993 = vmatmul.msk.f32.gmra.mxu3 %vm1556_vm11, %v1232_v41 }
 0x101   : > { %970 = vmatmul.msk.f32.gmra.mxu0 %vm1586_vm13, %v1232_v41  ;;  %978 = vmatmul.msk.f32.gmra.mxu1 %vm1586_vm13, %v1232_v41 }
 0x102   : > { %986 = vmatmul.msk.f32.gmra.mxu2 %vm1586_vm13, %v1232_v41  ;;  %994 = vmatmul.msk.f32.gmra.mxu3 %vm1586_vm13, %v1232_v41 }
 0x109   : > { %971 = vmatmul.msk.f32.gmra.mxu0 %vm1606_vm15, %v1232_v41  ;;  %979 = vmatmul.msk.f32.gmra.mxu1 %vm1606_vm15, %v1232_v41 }
 0x10a   : > { %987 = vmatmul.msk.f32.gmra.mxu2 %vm1606_vm15, %v1232_v41  ;;  %995 = vmatmul.msk.f32.gmra.mxu3 %vm1606_vm15, %v1232_v41 }
 0x111   : > { %972 = vmatmul.msk.f32.gmra.mxu0 %vm1626_vm1, %v1232_v41  ;;  %980 = vmatmul.msk.f32.gmra.mxu1 %vm1626_vm1, %v1232_v41 }
 0x112   : > { %988 = vmatmul.msk.f32.gmra.mxu2 %vm1626_vm1, %v1232_v41  ;;  %996 = vmatmul.msk.f32.gmra.mxu3 %vm1626_vm1, %v1232_v41 }
 0x119   : > { %973 = vmatmul.msk.f32.gmra.mxu0 %vm1646_vm3, %v1232_v41  ;;  %981 = vmatmul.msk.f32.gmra.mxu1 %vm1646_vm3, %v1232_v41 }
 0x11a   : > { %989 = vmatmul.msk.f32.gmra.mxu2 %vm1646_vm3, %v1232_v41  ;;  %997 = vmatmul.msk.f32.gmra.mxu3 %vm1646_vm3, %v1232_v41 }
 0x11e   : > { %v417_v26 = vpop.f32.mrf.mxu0  ;;  %v458_v28 = vpop.f32.mrf.mxu1 }
 0x11f   : > { %728 = vst [vmem:[%s1759_s7] sm:$0xff] %v417_v26 }
 0x120   : > { %729 = vst [vmem:[%s1759_s7 + $0x8] sm:$0xff] %v458_v28 }
 0x125   : > { %v499_v29 = vpop.f32.mrf.mxu2  ;;  %v540_v30 = vpop.f32.mrf.mxu3 }
 0x126   : > { %730 = vst [vmem:[%s1759_s7 + $0x10] sm:$0xff] %v499_v29  ;;  %v420_v31 = vpop.f32.mrf.mxu0  ;;  %v461_v32 = vpop.f32.mrf.mxu1 }
 0x127   : > { %731 = vst [vmem:[%s1759_s7 + $0x18] sm:$0xff] %v540_v30 }
 0x128   : > { %736 = vst [vmem:[%s1759_s7 + $0x40] sm:$0xff] %v420_v31 }
 0x129   : > { %737 = vst [vmem:[%s1759_s7 + $0x48] sm:$0xff] %v461_v32 }
 0x12d   : > { %v502_v33 = vpop.f32.mrf.mxu2  ;;  %v543_v34 = vpop.f32.mrf.mxu3 }
 0x12e   : > { %738 = vst [vmem:[%s1759_s7 + $0x50] sm:$0xff] %v502_v33  ;;  %v423_v35 = vpop.f32.mrf.mxu0  ;;  %v464_v36 = vpop.f32.mrf.mxu1 }
 0x12f   : > { %739 = vst [vmem:[%s1759_s7 + $0x58] sm:$0xff] %v543_v34 }
 0x130   : > { %744 = vst [vmem:[%s1759_s7 + $0x80] sm:$0xff] %v423_v35 }
 0x131   : > { %745 = vst [vmem:[%s1759_s7 + $0x88] sm:$0xff] %v464_v36 }
 0x135   : > { %v505_v37 = vpop.f32.mrf.mxu2  ;;  %v546_v38 = vpop.f32.mrf.mxu3 }
 0x136   : > { %746 = vst [vmem:[%s1759_s7 + $0x90] sm:$0xff] %v505_v37  ;;  %v426_v0 = vpop.f32.mrf.mxu0  ;;  %v467_v39 = vpop.f32.mrf.mxu1 }
 0x137   : > { %747 = vst [vmem:[%s1759_s7 + $0x98] sm:$0xff] %v546_v38 }
 0x138   : > { %752 = vst [vmem:[%s1759_s7 + $0xc0] sm:$0xff] %v426_v0 }
 0x139   : > { %753 = vst [vmem:[%s1759_s7 + $0xc8] sm:$0xff] %v467_v39 }
 0x13d   : > { %v508_v40 = vpop.f32.mrf.mxu2  ;;  %v549_v41 = vpop.f32.mrf.mxu3 }
 0x13e   : > { %754 = vst [vmem:[%s1759_s7 + $0xd0] sm:$0xff] %v508_v40  ;;  %v429_v42 = vpop.f32.mrf.mxu0  ;;  %v470_v43 = vpop.f32.mrf.mxu1 }
 0x13f   : > { %755 = vst [vmem:[%s1759_s7 + $0xd8] sm:$0xff] %v549_v41 }
 0x140   : > { %760 = vst [vmem:[%s1759_s7 + $0x100] sm:$0xff] %v429_v42 }
 0x141   : > { %761 = vst [vmem:[%s1759_s7 + $0x108] sm:$0xff] %v470_v43 }
 0x145   : > { %v511_v44 = vpop.f32.mrf.mxu2  ;;  %v552_v45 = vpop.f32.mrf.mxu3 }
 0x146   : > { %762 = vst [vmem:[%s1759_s7 + $0x110] sm:$0xff] %v511_v44  ;;  %v432_v46 = vpop.f32.mrf.mxu0  ;;  %v473_v47 = vpop.f32.mrf.mxu1 }
 0x147   : > { %763 = vst [vmem:[%s1759_s7 + $0x118] sm:$0xff] %v552_v45 }
 0x148   : > { %768 = vst [vmem:[%s1759_s7 + $0x140] sm:$0xff] %v432_v46 }
 0x149   : > { %769 = vst [vmem:[%s1759_s7 + $0x148] sm:$0xff] %v473_v47 }
 0x14d   : > { %v514_v48 = vpop.f32.mrf.mxu2  ;;  %v555_v49 = vpop.f32.mrf.mxu3 }
 0x14e   : > { %770 = vst [vmem:[%s1759_s7 + $0x150] sm:$0xff] %v514_v48  ;;  %v435_v50 = vpop.f32.mrf.mxu0  ;;  %v476_v51 = vpop.f32.mrf.mxu1 }
 0x14f   : > { %771 = vst [vmem:[%s1759_s7 + $0x158] sm:$0xff] %v555_v49 }
 0x150   : > { %776 = vst [vmem:[%s1759_s7 + $0x180] sm:$0xff] %v435_v50 }
 0x151   : > { %777 = vst [vmem:[%s1759_s7 + $0x188] sm:$0xff] %v476_v51 }
 0x155   : > { %v517_v52 = vpop.f32.mrf.mxu2  ;;  %v558_v53 = vpop.f32.mrf.mxu3 }
 0x156   : > { %778 = vst [vmem:[%s1759_s7 + $0x190] sm:$0xff] %v517_v52  ;;  %v438_v54 = vpop.f32.mrf.mxu0  ;;  %v479_v55 = vpop.f32.mrf.mxu1 }
 0x157   : > { %779 = vst [vmem:[%s1759_s7 + $0x198] sm:$0xff] %v558_v53 }
 0x158   : > { %784 = vst [vmem:[%s1759_s7 + $0x1c0] sm:$0xff] %v438_v54 }
 0x159   : > { %785 = vst [vmem:[%s1759_s7 + $0x1c8] sm:$0xff] %v479_v55 }
 0x15d   : > { %v520_v56 = vpop.f32.mrf.mxu2  ;;  %v561_v57 = vpop.f32.mrf.mxu3 }
 0x15e   : > { %786 = vst [vmem:[%s1759_s7 + $0x1d0] sm:$0xff] %v520_v56  ;;  %v581_v58 = vpop.f32.mrf.mxu0  ;;  %v622_v59 = vpop.f32.mrf.mxu1 }
 0x15f   : > { %787 = vst [vmem:[%s1759_s7 + $0x1d8] sm:$0xff] %v561_v57 }
 0x160   : > { %732 = vst [vmem:[%s1759_s7 + $0x20] sm:$0xff] %v581_v58 }
 0x161   : > { %733 = vst [vmem:[%s1759_s7 + $0x28] sm:$0xff] %v622_v59 }
 0x165   : > { %v663_v60 = vpop.f32.mrf.mxu2  ;;  %v704_v61 = vpop.f32.mrf.mxu3 }
 0x166   : > { %734 = vst [vmem:[%s1759_s7 + $0x30] sm:$0xff] %v663_v60  ;;  %v584_v62 = vpop.f32.mrf.mxu0  ;;  %v625_v63 = vpop.f32.mrf.mxu1 }
 0x167   : > { %735 = vst [vmem:[%s1759_s7 + $0x38] sm:$0xff] %v704_v61 }
 0x168   : > { %740 = vst [vmem:[%s1759_s7 + $0x60] sm:$0xff] %v584_v62 }
 0x169   : > { %741 = vst [vmem:[%s1759_s7 + $0x68] sm:$0xff] %v625_v63 }
 0x16d   : > { %v666_v1 = vpop.f32.mrf.mxu2  ;;  %v707_v2 = vpop.f32.mrf.mxu3 }
 0x16e   : > { %742 = vst [vmem:[%s1759_s7 + $0x70] sm:$0xff] %v666_v1  ;;  %v587_v3 = vpop.f32.mrf.mxu0  ;;  %v628_v4 = vpop.f32.mrf.mxu1 }
 0x16f   : > { %743 = vst [vmem:[%s1759_s7 + $0x78] sm:$0xff] %v707_v2 }
 0x170   : > { %748 = vst [vmem:[%s1759_s7 + $0xa0] sm:$0xff] %v587_v3 }
 0x171   : > { %749 = vst [vmem:[%s1759_s7 + $0xa8] sm:$0xff] %v628_v4 }
 0x175   : > { %v669_v5 = vpop.f32.mrf.mxu2  ;;  %v710_v6 = vpop.f32.mrf.mxu3 }
 0x176   : > { %750 = vst [vmem:[%s1759_s7 + $0xb0] sm:$0xff] %v669_v5  ;;  %v590_v7 = vpop.f32.mrf.mxu0  ;;  %v631_v8 = vpop.f32.mrf.mxu1 }
 0x177   : > { %751 = vst [vmem:[%s1759_s7 + $0xb8] sm:$0xff] %v710_v6 }
 0x178   : > { %756 = vst [vmem:[%s1759_s7 + $0xe0] sm:$0xff] %v590_v7 }
 0x179   : > { %757 = vst [vmem:[%s1759_s7 + $0xe8] sm:$0xff] %v631_v8 }
 0x17d   : > { %v672_v9 = vpop.f32.mrf.mxu2  ;;  %v713_v10 = vpop.f32.mrf.mxu3 }
 0x17e   : > { %758 = vst [vmem:[%s1759_s7 + $0xf0] sm:$0xff] %v672_v9  ;;  %v593_v11 = vpop.f32.mrf.mxu0  ;;  %v634_v12 = vpop.f32.mrf.mxu1 }
 0x17f   : > { %759 = vst [vmem:[%s1759_s7 + $0xf8] sm:$0xff] %v713_v10 }
 0x180   : > { %764 = vst [vmem:[%s1759_s7 + $0x120] sm:$0xff] %v593_v11 }
 0x181   : > { %765 = vst [vmem:[%s1759_s7 + $0x128] sm:$0xff] %v634_v12 }
 0x185   : > { %v675_v13 = vpop.f32.mrf.mxu2  ;;  %v716_v14 = vpop.f32.mrf.mxu3 }
 0x186   : > { %766 = vst [vmem:[%s1759_s7 + $0x130] sm:$0xff] %v675_v13  ;;  %v596_v15 = vpop.f32.mrf.mxu0  ;;  %v637_v16 = vpop.f32.mrf.mxu1 }
 0x187   : > { %767 = vst [vmem:[%s1759_s7 + $0x138] sm:$0xff] %v716_v14 }
 0x188   : > { %772 = vst [vmem:[%s1759_s7 + $0x160] sm:$0xff] %v596_v15 }
 0x189   : > { %773 = vst [vmem:[%s1759_s7 + $0x168] sm:$0xff] %v637_v16 }
 0x18d   : > { %v678_v17 = vpop.f32.mrf.mxu2  ;;  %v719_v18 = vpop.f32.mrf.mxu3 }
 0x18e   : > { %774 = vst [vmem:[%s1759_s7 + $0x170] sm:$0xff] %v678_v17  ;;  %v599_v19 = vpop.f32.mrf.mxu0  ;;  %v640_v20 = vpop.f32.mrf.mxu1 }
 0x18f   : > { %775 = vst [vmem:[%s1759_s7 + $0x178] sm:$0xff] %v719_v18 }
 0x190   : > { %780 = vst [vmem:[%s1759_s7 + $0x1a0] sm:$0xff] %v599_v19 }
 0x191   : > { %781 = vst [vmem:[%s1759_s7 + $0x1a8] sm:$0xff] %v640_v20 }
 0x195   : > { %v681_v21 = vpop.f32.mrf.mxu2  ;;  %v722_v22 = vpop.f32.mrf.mxu3 }
 0x196   : > { %782 = vst [vmem:[%s1759_s7 + $0x1b0] sm:$0xff] %v681_v21  ;;  %v602_v23 = vpop.f32.mrf.mxu0  ;;  %v643_v24 = vpop.f32.mrf.mxu1 }
 0x197   : > { %783 = vst [vmem:[%s1759_s7 + $0x1b8] sm:$0xff] %v722_v22 }
 0x198   : > { %788 = vst [vmem:[%s1759_s7 + $0x1e0] sm:$0xff] %v602_v23 }
 0x199   : > { %789 = vst [vmem:[%s1759_s7 + $0x1e8] sm:$0xff] %v643_v24 }
 0x19d   : > { %v684_v25 = vpop.f32.mrf.mxu2  ;;  %v725_v27 = vpop.f32.mrf.mxu3 }
 0x19e   : > { %790 = vst [vmem:[%s1759_s7 + $0x1f0] sm:$0xff] %v684_v25 }
 0x19f   : > { %791 = vst [vmem:[%s1759_s7 + $0x1f8] sm:$0xff] %v725_v27 }
 0x1a0   : > { %1167 = shalt.err (!%p1164_p13)
}
 0x1a1   : > { %s1233_s29 = smov 1024   ;;  %s1234_s5 = smov 64  }
 0x1a2   : > { %1009 = dma.vmem_to_hbm [thread:$0]  (%p1301_p9), %s808_s19, 8192, %s810_s20, %s793_s12, %s1233_s29, %s1233_s29, %s1234_s5  }
 0x1a3 PF: > { %s824_s6 = sand.u32 1, %s1206_s9   ;;  %p1019_p0 = pnand %p919_p12, %p1308_p11 }
 0x1a4   : > { %s825_s21 = scalar_lea.sflag [#allocation5], %s824_s6 }
 0x1a5   : > { %p1020_p1 = pneg %p1019_p0 }
 0x1a7   : > { %1201 = dma.done.wait (%p1020_p1), %s825_s21, 8192  }
 0x1a8   : > { %1203 = vsyncadd (%p1020_p1), %s825_s21, 4294959104  ;;  %s21_s14 = sadd.s32 1, %s1226_s14   ;;  %s1890_s9 = smov %s1210_s10 }
 0x1a9   : > { %p18_p2 = scmp.ge.s32.totalorder %s21_s14, 4   ;;  %s1891_s10 = smov %s1214_s11 }
 0x1aa   : > { %s1892_s11 = smov %s1306_s23  ;;  %s1893_s12 = smov %s1222_s13 }
 0x1ab   : > { %s1894_s13 = smov %s1896_s17  ;;  %20 = sbr.rel (!%p18_p2) target bundleno = 8 (0x8), region = 86 }
 0x1b0   :  { %831 = vsyncpa [#allocation4], 1 }
 0x1b1   :  { %833 = vsyncpa [#allocation4 + $0x1], 1 }
 0x1b2   :  { %834 = vsyncpa [#allocation7], 1 }
 0x1b3   :  { %836 = vsyncpa [#allocation7 + $0x1], 1 }
 0x1b4   :  { %837 = vsyncpa [#allocation5], 1 }
 0x1b5   :  { %839 = vsyncpa [#allocation5 + $0x1], 1 }

</bundles_post_ra>
